<compile_context>
chip_gen: v7x
topology: tpu7x:2x2x1
jax: 0.10.0
libtpu: 0.0.40
codegen_flags: <defaults>
</compile_context>

<pallas_src>
import functools
import math

import jax
import jax.numpy as jnp
from jax.experimental import pallas as pl
from jax.experimental.pallas import tpu as pltpu


_VMEM_LIMIT_BYTES = 32 * 1024 * 1024      # safe scoped-VMEM request on v5e/v6e/v7x
_BLOCK_F32_BUDGET = 2 * 1024 * 1024       # ~2 MiB of f32 per compute tile (x2 in/out, x2 bufs)


def _sublane_pack(dtype):
    # sublane packing granularity: 8 rows for 32-bit, 16 for 16-bit, 32 for 8-bit dtypes
    return max(8, 32 // jnp.dtype(dtype).itemsize)


def _int_pow(inv_T):
    p = int(round(inv_T))
    if 1 <= p <= 4 and abs(inv_T - p) < 1e-12:
        return p
    return None


def _sharpen(x, inv_T, int_pow):
    """x ** inv_T.  Small integer exponents become a VPU multiply chain instead of the
    exp(log(x)*inv_T) pair jnp.power lowers to (2 EUP ops/element)."""
    if int_pow is not None:
        y = x
        for _ in range(int_pow - 1):
            y = y * x
        return y
    return jnp.power(x, inv_T)


def _kernel_last(x_ref, o_ref, *, inv_T, int_pow):
    # x_ref: (row_tile, N) tile; softmax over the lane (last) axis.
    x = _sharpen(x_ref[...].astype(jnp.float32), inv_T, int_pow)
    m = jnp.max(x, axis=-1, keepdims=True)
    e = jnp.exp(x - m)
    s = jnp.sum(e, axis=-1, keepdims=True)
    # one reciprocal per row on the EUP, then a per-element VPU multiply
    o_ref[...] = (e * pl.reciprocal(s)).astype(o_ref.dtype)


def _kernel_mid(x_ref, o_ref, *, inv_T, int_pow):
    # x_ref: (1, N, post_tile) tile; softmax over axis 1 (sublanes), lanes stay dense.
    x = _sharpen(x_ref[...].astype(jnp.float32), inv_T, int_pow)
    m = jnp.max(x, axis=1, keepdims=True)
    e = jnp.exp(x - m)
    s = jnp.sum(e, axis=1, keepdims=True)
    o_ref[...] = (e * pl.reciprocal(s)).astype(o_ref.dtype)


def sharpen_softmax(pred, T, dim=0):
    """Equivalent of SharpenSoftmax(T, dim).forward(pred)."""
    inv_T = 1.0 / float(T)
    int_pow = _int_pow(inv_T)
    ndim = pred.ndim
    dim = dim % ndim
    shape = pred.shape

    N = shape[dim]
    pre = math.prod(shape[:dim])
    post = math.prod(shape[dim + 1:])

    itemsize = jnp.dtype(pred.dtype).itemsize
    total = pre * N * post
    cost = pl.CostEstimate(
        flops=6 * total,
        transcendentals=(1 if int_pow is not None else 3) * total,
        bytes_accessed=2 * total * itemsize,
    )

    if post == 1:
        # Softmax axis is (effectively) the trailing axis: 2D (M, N), N on lanes.
        # TODO(synk): when N < 128 here lane utilization is low; avoiding that would
        # require a real transpose, which costs more HBM traffic than it saves.
        M = pre
        x2 = pred.reshape(M, N)  # pure reshape, no data movement
        pack = _sublane_pack(pred.dtype)
        rows = (_BLOCK_F32_BUDGET // 4) // max(N, 1)
        rows = max(pack, min(1024, (rows // pack) * pack))
        row_tile = M if M <= rows else rows
        grid = (pl.cdiv(M, row_tile),)

        out = pl.pallas_call(
            functools.partial(_kernel_last, inv_T=inv_T, int_pow=int_pow),
            out_shape=jax.ShapeDtypeStruct((M, N), pred.dtype),
            grid_spec=pltpu.PrefetchScalarGridSpec(
                num_scalar_prefetch=0,
                grid=grid,
                in_specs=[pl.BlockSpec((row_tile, N), lambda i: (i, 0))],
                out_specs=pl.BlockSpec((row_tile, N), lambda i: (i, 0)),
            ),
            compiler_params=pltpu.CompilerParams(
                dimension_semantics=("parallel",),
                vmem_limit_bytes=_VMEM_LIMIT_BYTES,
            ),
            cost_estimate=cost,
        )(x2)
        return out.reshape(shape)

    # Softmax over a non-trailing axis (e.g. dim=0): reshape (no transpose!) to
    # (pre, N, post); reduce over the sublane axis, keep `post` dense on lanes.
    x3 = pred.reshape(pre, N, post)
    lanes = ((_BLOCK_F32_BUDGET // 4) // max(N, 1)) // 128 * 128
    lanes = max(128, lanes)
    post_tile = post if post <= lanes else lanes
    grid = (pre, pl.cdiv(post, post_tile))
    # TODO(synk): if N alone is so large that (N, 128) f32 overflows VMEM, split N with
    # an online (flash-style) max/sum accumulation; not needed for typical shapes.

    out = pl.pallas_call(
        functools.partial(_kernel_mid, inv_T=inv_T, int_pow=int_pow),
        out_shape=jax.ShapeDtypeStruct((pre, N, post), pred.dtype),
        grid_spec=pltpu.PrefetchScalarGridSpec(
            num_scalar_prefetch=0,
            grid=grid,
            in_specs=[pl.BlockSpec((1, N, post_tile), lambda i, j: (i, 0, j))],
            out_specs=pl.BlockSpec((1, N, post_tile), lambda i, j: (i, 0, j)),
        ),
        compiler_params=pltpu.CompilerParams(
            dimension_semantics=("parallel", "parallel"),
            vmem_limit_bytes=_VMEM_LIMIT_BYTES,
        ),
        cost_estimate=cost,
    )(x3)
    return out.reshape(shape)


if __name__ == "__main__":
    key = jax.random.PRNGKey(0)
    # SharpenSoftmax(T=0.5, dim=0) applied to a [2, 4, 16, 16] NCHW-style tensor.
    T = 0.5
    x = jax.random.uniform(key, (2, 4, 16, 16), dtype=jnp.float32, minval=0.01, maxval=1.0)

    out = jax.block_until_ready(sharpen_softmax(x, T=T, dim=0))
    ref = jax.nn.softmax(jnp.power(x, 1.0 / T), axis=0)
    assert out.shape == x.shape and out.dtype == x.dtype
    assert jnp.allclose(out, ref, atol=1e-5, rtol=1e-5)

    # Exercise the other layouts (middle axis and trailing axis) for correctness.
    for d in (1, 3):
        o = jax.block_until_ready(sharpen_softmax(x, T=T, dim=d))
        r = jax.nn.softmax(jnp.power(x, 1.0 / T), axis=d)
        assert jnp.allclose(o, r, atol=1e-5, rtol=1e-5)

    print("KERNEL_OK")
</pallas_src>

<mosaic_0001>
module attributes {stable_mosaic.version = 11 : i64} {
  func.func @_kernel_mid(%arg0: i32, %arg1: i32, %arg2: memref<1x2x1024xf32, #tpu.memory_space<vmem>>, %arg3: memref<1x2x1024xf32, #tpu.memory_space<vmem>>) attributes {dimension_semantics = [#tpu.dimension_semantics<parallel>, #tpu.dimension_semantics<parallel>], iteration_bounds = array<i64: 1, 1>, scalar_prefetch = 0 : i64, scratch_operands = 0 : i64, tpu.core_type = #tpu.core_type<tc>, window_params = [{transform_indices = @transform_0, window_bounds = array<i64: 1, 2, 1024>}, {transform_indices = @transform_1, window_bounds = array<i64: 1, 2, 1024>}]} {
    %c0 = arith.constant 0 : index
    %c0_0 = arith.constant 0 : index
    %c0_1 = arith.constant 0 : index
    %0 = vector.load %arg2[%c0, %c0_0, %c0_1] : memref<1x2x1024xf32, #tpu.memory_space<vmem>>, vector<1x2x1024xf32>
    %1 = arith.mulf %0, %0 : vector<1x2x1024xf32>
    %cst = arith.constant dense<0xFF800000> : vector<1x1024xf32>
    %2 = vector.multi_reduction <maximumf>, %1, %cst [1] : vector<1x2x1024xf32> to vector<1x1024xf32>
    %3 = vector.shape_cast %2 : vector<1x1024xf32> to vector<1x1x1024xf32>
    %4 = vector.broadcast %3 : vector<1x1x1024xf32> to vector<1x2x1024xf32>
    %5 = arith.subf %1, %4 : vector<1x2x1024xf32>
    %6 = math.exp %5 : vector<1x2x1024xf32>
    %cst_2 = arith.constant dense<0.000000e+00> : vector<1x1024xf32>
    %7 = vector.multi_reduction <add>, %6, %cst_2 [1] : vector<1x2x1024xf32> to vector<1x1024xf32>
    %8 = vector.shape_cast %7 : vector<1x1024xf32> to vector<1x1x1024xf32>
    %9 = tpu.reciprocal %8 : vector<1x1x1024xf32> -> vector<1x1x1024xf32>
    %10 = vector.broadcast %9 : vector<1x1x1024xf32> to vector<1x2x1024xf32>
    %11 = arith.mulf %6, %10 : vector<1x2x1024xf32>
    %c0_3 = arith.constant 0 : index
    %c0_4 = arith.constant 0 : index
    %c0_5 = arith.constant 0 : index
    %12 = vector.load %arg3[%c0_3, %c0_4, %c0_5] : memref<1x2x1024xf32, #tpu.memory_space<vmem>>, vector<1x2x1024xf32>
    tpu.vector_store %arg3[%c0_3, %c0_4, %c0_5], %11 {strides = array<i32>} : memref<1x2x1024xf32, #tpu.memory_space<vmem>>, vector<1x2x1024xf32>,
    return
  }
  func.func @transform_0(%arg0: i32, %arg1: i32) -> (i32, i32, i32) {
    %c0_i32 = arith.constant 0 : i32
    %c0_i32_0 = arith.constant 0 : i32
    return %arg0, %c0_i32, %arg1 : i32, i32, i32
  }
  func.func @transform_1(%arg0: i32, %arg1: i32) -> (i32, i32, i32) {
    %c0_i32 = arith.constant 0 : i32
    %c0_i32_0 = arith.constant 0 : i32
    return %arg0, %c0_i32, %arg1 : i32, i32, i32
  }
}

</mosaic_0001>

<bundles_post_ra>
// kernel: tpu_custom_call.1
= control target key start
LH: loop header
LB: loop body
LE: loop exit
PB: predicated region body
PF: predicated region fallthrough
CT: control target
= control target key end

     0   :  { %6 = vsyncpa [#allocation3], 0  ;;  %s513_s0 = inlined_call_operand.hbm [shape: f32[1,2,1024], index: 0, kind: input, shape index: {}]   ;;  %s514_s1 = inlined_call_operand.hbm [shape: f32[1,2,1024], index: 1, kind: output, shape index: {}]  }
   0x1   :  { %7 = vsyncpa [#allocation4], 0  ;;  %s418_s6 = smov [#allocation2]   ;;  %s370_s10 = scalar_lea.hbm %s513_s0, 256 }
   0x2   :  { %s14_s7 = sshll.u32 %s418_s6, 4  ;;  %p371_p0 = scmp.ne.s32.totalorder %s513_s0, %s370_s10  ;;  %s15_s7 = int_to_ptr.vmem [resolvable:$true] %s14_s7 }
   0x3   :  { %p374_p1 = scmp.lt.u32.totalorder %s370_s10, %s513_s0 }
   0x5   :  { %p376_p2 = pnand %p374_p1, %p371_p0 }
   0x7   :  { %379 = shalt.err (!%p376_p2)
}
   0x8   :  { %s380_s15 = scalar_lea.vmem %s15_s7, 256  ;;  %p385_p4 = scmp.lt.s32.totalorder %s15_s7, %s15_s7 }
   0x9   :  { %p381_p3 = scmp.ne.s32.totalorder %s15_s7, %s380_s15  ;;  %p386_p5 = scmp.lt.s32.totalorder %s380_s15, %s380_s15 }
   0xb   :  { %p387_p6 = por %p386_p5, %p385_p4 }
   0xd   :  { %p388_p7 = pnand %p387_p6, %p381_p3 }
   0xf   :  { %391 = shalt.err (!%p388_p7)
}
  0x10   :  { %17 = dma.hbm_to_vmem [thread:$0]  %s513_s0, 256, %s15_s7, [#allocation3]  }
  0x11   :  { %414 = dma.done.wait [#allocation3], 256  }
  0x12   :  { %415 = vsyncadd [#allocation3], 4294967040  ;;  %v31_v0 = vlaneseq  ;;  %v419_v1 = vmov 1983009808   ;;  %v21_v6 = vld [vmem:[#allocation2] sm:$0xff]  ;;  %v22_v7 = vld [vmem:[#allocation2 + $0x8] sm:$0xff] }
  0x13   :  { %v29_v2 = vunpack.c.l.s4 %v419_v1  ;;  %v445_v8 = vmul.f32 %v21_v6, %v21_v6  ;;  %v447_v9 = vmul.f32 %v22_v7, %v22_v7  ;;  %vm69_vm0 = vcmask 1041408   ;;  %s420_s0 = smov [#allocation5]  }
  0x14   :  { %v32_v3 = vshrl.u32 %v31_v0, 7  ;;  %s338_s18 = sshll.u32 %s420_s0, 4  ;;  %s339_s18 = int_to_ptr.vmem [resolvable:$true] %s338_s18 }
  0x15   :  { %v30_v4 = vunpack.c.0.s8 %v29_v2  ;;  %v27_v10 = vcombine.high %v445_v8, %v445_v8  ;;  %v44_v12 = vcombine.high %v447_v9, %v447_v9  ;;  %s392_s19 = scalar_lea.vmem %s339_s18, 256  ;;  %p397_p9 = scmp.lt.s32.totalorder %s339_s18, %s339_s18 }
  0x16   :  { %p393_p8 = scmp.ne.s32.totalorder %s339_s18, %s392_s19  ;;  %p398_p10 = scmp.lt.s32.totalorder %s392_s19, %s392_s19 }
  0x17   :  { %v443_v5 = vsub.s32 %v30_v4, %v32_v3 }
  0x18   :  { %p399_p11 = por %p398_p10, %p397_p9 }
  0x19   :  { %v34_v11 = vrot.slane %v445_v8, %v443_v5  ;;  %v51_v13 = vrot.slane %v447_v9, %v443_v5  ;;  %v41_v14 = vrot.slane %v27_v10, %v443_v5  ;;  %v58_v17 = vrot.slane %v44_v12, %v443_v5 }
  0x1a   :  { %p400_p12 = pnand %p399_p11, %p393_p8 }
  0x1b   :  { %v42_v15 = vcombine.high %v34_v11, %v34_v11  ;;  %v70_v16 = vsel %vm69_vm0, %v34_v11, -inf  ;;  %v59_v19 = vcombine.high %v51_v13, %v51_v13  ;;  %v98_v20 = vsel %vm69_vm0, %v51_v13, -inf }
  0x1c   :  { %v71_v18 = vrot.slane %v70_v16, 4  ;;  %v43_v21 = vcombine.high %v41_v14, %v41_v14  ;;  %v84_v23 = vsel %vm69_vm0, %v41_v14, -inf  ;;  %v60_v24 = vcombine.high %v58_v17, %v58_v17 }
  0x1d   :  { %v77_v22 = vsel %vm69_vm0, %v42_v15, -inf  ;;  %v85_v27 = vrot.slane %v84_v23, 4  ;;  %v99_v28 = vrot.slane %v98_v20, 4  ;;  %v105_v30 = vsel %vm69_vm0, %v59_v19, -inf }
  0x1e   :  { %v72_v25 = vmax.f32 %v70_v16, %v71_v18  ;;  %v78_v26 = vrot.slane %v77_v22, 4  ;;  %v91_v29 = vsel %vm69_vm0, %v43_v21, -inf  ;;  %v112_v31 = vsel %vm69_vm0, %v58_v17, -inf }
  0x1f   :  { %v119_v32 = vsel %vm69_vm0, %v60_v24, -inf  ;;  %v86_v35 = vmax.f32 %v84_v23, %v85_v27  ;;  %v92_v36 = vrot.slane %v91_v29, 4  ;;  %v100_v37 = vmax.f32 %v98_v20, %v99_v28 }
  0x20   :  { %v73_v33 = vrot.slane %v72_v25, 2  ;;  %v79_v34 = vmax.f32 %v77_v22, %v78_v26  ;;  %v106_v38 = vrot.slane %v105_v30, 4  ;;  %v113_v39 = vrot.slane %v112_v31, 4 }
  0x21   :  { %v120_v40 = vrot.slane %v119_v32, 4  ;;  %v87_v43 = vrot.slane %v86_v35, 2  ;;  %v93_v44 = vmax.f32 %v91_v29, %v92_v36  ;;  %v101_v45 = vrot.slane %v100_v37, 2 }
  0x22   :  { %v74_v41 = vmax.f32 %v72_v25, %v73_v33  ;;  %v80_v42 = vrot.slane %v79_v34, 2  ;;  %v107_v46 = vmax.f32 %v105_v30, %v106_v38  ;;  %v114_v47 = vmax.f32 %v112_v31, %v113_v39 }
  0x23   :  { %v121_v48 = vmax.f32 %v119_v32, %v120_v40  ;;  %v88_v51 = vmax.f32 %v86_v35, %v87_v43  ;;  %v94_v52 = vrot.slane %v93_v44, 2  ;;  %v102_v53 = vmax.f32 %v100_v37, %v101_v45 }
  0x24   :  { %v75_v49 = vrot.slane %v74_v41, 1  ;;  %v81_v50 = vmax.f32 %v79_v34, %v80_v42  ;;  %v108_v54 = vrot.slane %v107_v46, 2  ;;  %v115_v55 = vrot.slane %v114_v47, 2 }
  0x25   :  { %v122_v56 = vrot.slane %v121_v48, 2  ;;  %v89_v59 = vrot.slane %v88_v51, 1  ;;  %v95_v60 = vmax.f32 %v93_v44, %v94_v52  ;;  %v103_v61 = vrot.slane %v102_v53, 1 }
  0x26   :  { %v76_v57 = vmax.f32 %v74_v41, %v75_v49  ;;  %v82_v58 = vrot.slane %v81_v50, 1  ;;  %v109_v62 = vmax.f32 %v107_v46, %v108_v54  ;;  %v116_v63 = vmax.f32 %v114_v47, %v115_v55 }
  0x27   :  { %v123_v0 = vmax.f32 %v121_v48, %v122_v56  ;;  %v90_v2 = vmax.f32 %v88_v51, %v89_v59  ;;  %v96_v3 = vrot.slane %v95_v60, 1  ;;  %v104_v4 = vmax.f32 %v102_v53, %v103_v61 }
  0x28   :  { %v83_v1 = vmax.f32 %v81_v50, %v82_v58  ;;  %v110_v6 = vrot.slane %v109_v62, 1  ;;  %v117_v7 = vrot.slane %v116_v63, 1 }
  0x29   :  { %v124_v10 = vrot.slane %v123_v0, 1  ;;  %v97_v11 = vmax.f32 %v95_v60, %v96_v3 }
  0x2a   :  { %v134_v12 = vcombine.low %v76_v57, %v83_v1  ;;  %v111_v13 = vmax.f32 %v109_v62, %v110_v6  ;;  %v118_v14 = vmax.f32 %v116_v63, %v117_v7 }
  0x2b   :  { %v125_v15 = vmax.f32 %v123_v0, %v124_v10  ;;  %v135_v16 = vcombine.low %v90_v2, %v97_v11 }
  0x2c   :  { %v142_v17 = vrot.slane %v134_v12, %v443_v5  ;;  %v151_v18 = vcombine.low %v104_v4, %v111_v13 }
  0x2d   :  { %v152_v19 = vcombine.low %v118_v14, %v125_v15  ;;  %v149_v20 = vrot.slane %v135_v16, %v443_v5 }
  0x2e   :  { %v159_v21 = vrot.slane %v151_v18, %v443_v5 }
  0x2f   :  { %v166_v22 = vrot.slane %v152_v19, %v443_v5  ;;  %v150_v23 = vcombine.low %v142_v17, %v149_v20 }
  0x31   :  { %v167_v24 = vcombine.low %v159_v21, %v166_v22  ;;  %v170_v25 = vsub.f32 %v445_v8, %v150_v23 }
  0x33   :  { %v171_v26 = vsub.f32 %v447_v9, %v167_v24  ;;  %v172_v27 = vmul.f32 1.442695, %v170_v25 }
  0x35   :  { %v174_v28 = vmul.f32 1.442695, %v171_v26  ;;  %350 = vpow2.f32 %v172_v27 }
  0x37   :  { %352 = vpow2.f32 %v174_v28 }
  0x3f   :  { %v473_v29 = vpop.eup %350 }
  0x40   :  { %v178_v31 = vcombine.high %v473_v29, %v473_v29  ;;  %v185_v32 = vrot.slane %v473_v29, %v443_v5 }
  0x41   :  { %v475_v30 = vpop.eup %352 }
  0x42   :  { %v195_v33 = vcombine.high %v475_v30, %v475_v30  ;;  %v202_v8 = vrot.slane %v475_v30, %v443_v5  ;;  %v192_v9 = vrot.slane %v178_v31, %v443_v5  ;;  %v193_v34 = vcombine.high %v185_v32, %v185_v32 }
  0x43   :  { %v220_v35 = vsel %vm69_vm0, %v185_v32, 0.0 }
  0x44   :  { %v221_v36 = vrot.slane %v220_v35, 4  ;;  %v209_v37 = vrot.slane %v195_v33, %v443_v5  ;;  %v210_v38 = vcombine.high %v202_v8, %v202_v8  ;;  %v248_v39 = vsel %vm69_vm0, %v202_v8, 0.0 }
  0x45   :  { %v194_v40 = vcombine.high %v192_v9, %v192_v9  ;;  %v227_v41 = vsel %vm69_vm0, %v193_v34, 0.0  ;;  %v234_v42 = vsel %vm69_vm0, %v192_v9, 0.0  ;;  %v249_v43 = vrot.slane %v248_v39, 4 }
  0x46   :  { %v222_v44 = vadd.f32 %v221_v36, %v220_v35  ;;  %v228_v45 = vrot.slane %v227_v41, 4  ;;  %v235_v46 = vrot.slane %v234_v42, 4  ;;  %v211_v47 = vcombine.high %v209_v37, %v209_v37 }
  0x47   :  { %v241_v48 = vsel %vm69_vm0, %v194_v40, 0.0  ;;  %v250_v49 = vadd.f32 %v249_v43, %v248_v39  ;;  %v255_v50 = vsel %vm69_vm0, %v210_v38, 0.0  ;;  %v262_v51 = vsel %vm69_vm0, %v209_v37, 0.0 }
  0x48   :  { %v223_v52 = vrot.slane %v222_v44, 2  ;;  %v229_v53 = vadd.f32 %v228_v45, %v227_v41  ;;  %v236_v54 = vadd.f32 %v235_v46, %v234_v42  ;;  %v242_v55 = vrot.slane %v241_v48, 4 }
  0x49   :  { %v251_v56 = vrot.slane %v250_v49, 2  ;;  %v256_v57 = vrot.slane %v255_v50, 4  ;;  %v263_v58 = vrot.slane %v262_v51, 4  ;;  %v269_v59 = vsel %vm69_vm0, %v211_v47, 0.0 }
  0x4a   :  { %v224_v60 = vadd.f32 %v223_v52, %v222_v44  ;;  %v230_v61 = vrot.slane %v229_v53, 2  ;;  %v237_v62 = vrot.slane %v236_v54, 2  ;;  %v243_v63 = vadd.f32 %v242_v55, %v241_v48 }
  0x4b   :  { %v252_v0 = vadd.f32 %v251_v56, %v250_v49  ;;  %v257_v1 = vadd.f32 %v256_v57, %v255_v50  ;;  %v264_v2 = vadd.f32 %v263_v58, %v262_v51  ;;  %v270_v3 = vrot.slane %v269_v59, 4 }
  0x4c   :  { %v225_v4 = vrot.slane %v224_v60, 1  ;;  %v231_v6 = vadd.f32 %v230_v61, %v229_v53  ;;  %v238_v7 = vadd.f32 %v237_v62, %v236_v54  ;;  %v244_v10 = vrot.slane %v243_v63, 2 }
  0x4d   :  { %v253_v11 = vrot.slane %v252_v0, 1  ;;  %v258_v12 = vrot.slane %v257_v1, 2  ;;  %v265_v13 = vrot.slane %v264_v2, 2  ;;  %v271_v14 = vadd.f32 %v270_v3, %v269_v59 }
  0x4e   :  { %v226_v15 = vadd.f32 %v225_v4, %v224_v60  ;;  %v232_v16 = vrot.slane %v231_v6, 1  ;;  %v239_v17 = vrot.slane %v238_v7, 1  ;;  %v245_v18 = vadd.f32 %v244_v10, %v243_v63 }
  0x4f   :  { %v254_v19 = vadd.f32 %v253_v11, %v252_v0  ;;  %v259_v20 = vadd.f32 %v258_v12, %v257_v1  ;;  %v266_v21 = vadd.f32 %v265_v13, %v264_v2  ;;  %v272_v22 = vrot.slane %v271_v14, 2 }
  0x50   :  { %v233_v23 = vadd.f32 %v232_v16, %v231_v6  ;;  %v240_v24 = vadd.f32 %v239_v17, %v238_v7  ;;  %v246_v25 = vrot.slane %v245_v18, 1  ;;  %354 = vrcp.f32 %v226_v15 }
  0x51   :  { %v260_v26 = vrot.slane %v259_v20, 1  ;;  %v267_v27 = vrot.slane %v266_v21, 1  ;;  %v273_v28 = vadd.f32 %v272_v22, %v271_v14  ;;  %356 = vrcp.f32 %v254_v19 }
  0x52   :  { %v247_v31 = vadd.f32 %v246_v25, %v245_v18  ;;  %358 = vrcp.f32 %v233_v23 }
  0x53   :  { %360 = vrcp.f32 %v240_v24  ;;  %v261_v32 = vadd.f32 %v260_v26, %v259_v20  ;;  %v268_v33 = vadd.f32 %v267_v27, %v266_v21  ;;  %v274_v8 = vrot.slane %v273_v28, 1 }
  0x54   :  { %362 = vrcp.f32 %v247_v31 }
  0x55   :  { %v275_v9 = vadd.f32 %v274_v8, %v273_v28  ;;  %364 = vrcp.f32 %v261_v32 }
  0x56   :  { %366 = vrcp.f32 %v268_v33 }
  0x57   :  { %368 = vrcp.f32 %v275_v9 }
  0x5a   :  { %v355_v34 = vpop.eup %354 }
  0x5b   :  { %v357_v35 = vpop.eup %356 }
  0x5c   :  { %v359_v36 = vpop.eup %358 }
  0x5d   :  { %v361_v37 = vpop.eup %360  ;;  %v292_v38 = vcombine.low %v355_v34, %v359_v36 }
  0x5e   :  { %v363_v39 = vpop.eup %362 }
  0x5f   :  { %v365_v40 = vpop.eup %364  ;;  %v293_v41 = vcombine.low %v361_v37, %v363_v39  ;;  %v300_v42 = vrot.slane %v292_v38, %v443_v5 }
  0x60   :  { %v367_v43 = vpop.eup %366  ;;  %v309_v44 = vcombine.low %v357_v35, %v365_v40 }
  0x61   :  { %v369_v45 = vpop.eup %368  ;;  %v307_v46 = vrot.slane %v293_v41, %v443_v5 }
  0x62   :  { %v310_v47 = vcombine.low %v367_v43, %v369_v45  ;;  %v317_v48 = vrot.slane %v309_v44, %v443_v5 }
  0x63   :  { %v308_v49 = vcombine.low %v300_v42, %v307_v46 }
  0x64   :  { %v324_v50 = vrot.slane %v310_v47, %v443_v5 }
  0x65   :  { %v328_v51 = vmul.f32 %v473_v29, %v308_v49 }
  0x66   :  { %v325_v52 = vcombine.low %v317_v48, %v324_v50 }
  0x67   :  { %330 = vst [vmem:[#allocation5] sm:$0xff] %v328_v51 }
  0x68   :  { %v329_v53 = vmul.f32 %v475_v30, %v325_v52 }
  0x6a   :  { %331 = vst [vmem:[#allocation5 + $0x8] sm:$0xff] %v329_v53 }
  0x6b   :  { %403 = shalt.err (!%p400_p12)
}
  0x6c   :  { %s404_s22 = scalar_lea.hbm %s514_s1, 256 }
  0x6d   :  { %p405_p13 = scmp.ne.s32.totalorder %s514_s1, %s404_s22  ;;  %p408_p0 = scmp.lt.u32.totalorder %s404_s22, %s514_s1 }
  0x6f   :  { %p410_p1 = pnand %p408_p0, %p405_p13 }
  0x71   :  { %413 = shalt.err (!%p410_p1)
}
  0x72   :  { %341 = dma.vmem_to_hbm [thread:$0]  %s339_s18, 256, %s514_s1, [#allocation4]  }
  0x73   :  { %416 = dma.done.wait [#allocation4], 256  }
  0x74   :  { %417 = vsyncadd [#allocation4], 4294967040 }
  0x75   :  { %345 = vsyncpa [#allocation3], 1 }
  0x76   :  { %346 = vsyncpa [#allocation4], 1 }

</bundles_post_ra>
